<compile_context>
chip_gen: v5e
topology: v5e:2x2
jax: 0.10.0
libtpu: 0.0.40
codegen_flags: <defaults>
</compile_context>

<pallas_src>
import jax
import jax.numpy as jnp
from jax.experimental import pallas as pl
from jax.experimental.pallas import tpu as pltpu

_LANE = 128
_SUBLANE = 8
_MAX_TILE_B = 2048      # upper bound on rows per grid step (1-2 steps typical)
_SINGLE_TILE_B = 256    # below this, a single tile (per-step overhead dominates)


def _round_up(x, m):
    return ((x + m - 1) // m) * m


def _cdiv(a, b):
    return -(-a // b)


def _choose_tiling(B):
    """Pick (tile_b, n_tiles): even tile count for v7x's 2 TCs, <= _MAX_TILE_B rows."""
    if B <= _SINGLE_TILE_B:
        n = 1
    elif B <= 2 * _MAX_TILE_B:
        n = 2
    else:
        n = 2 * _cdiv(B, 2 * _MAX_TILE_B)
    tile_b = _round_up(_cdiv(B, n), _SUBLANE)
    n = _cdiv(B, tile_b)
    return tile_b, n


def _dqn_mlp_kernel(x_ref, w1_ref, w2_ref, w3_ref, b_ref, o_ref):
    """One batch tile of ReLU(ReLU(x@W1+b1)@W2+b2)@W3+b3.

    x_ref : (tile_b, state_dim)   f32  (unpadded contracting dim)
    w1_ref: (state_dim, hp)       f32  (hidden padded to 128 lanes with zeros)
    w2_ref: (hp, hp)              f32
    w3_ref: (hp, action_dim)      f32  (rows >= hidden_dim are zeros)
    b_ref : (3, hp)               f32  packed, zero-padded biases
    o_ref : (tile_b, action_dim)  f32
    """
    act = o_ref.shape[1]

    h1 = jnp.dot(x_ref[...], w1_ref[...], preferred_element_type=jnp.float32)
    h1 = jnp.maximum(h1 + b_ref[0:1, :], 0.0)          # f32 epilogue (v5e-safe)

    h2 = jnp.dot(h1, w2_ref[...], preferred_element_type=jnp.float32)
    h2 = jnp.maximum(h2 + b_ref[1:2, :], 0.0)

    q = jnp.dot(h2, w3_ref[...], preferred_element_type=jnp.float32)
    o_ref[...] = (q + b_ref[2:3, :act]).astype(o_ref.dtype)


def prepare_params(params):
    """One-time weight padding/packing; keep OUT of the per-call forward path."""
    w1 = jnp.asarray(params["w1"], jnp.float32)
    w2 = jnp.asarray(params["w2"], jnp.float32)
    w3 = jnp.asarray(params["w3"], jnp.float32)
    b1 = jnp.asarray(params["b1"], jnp.float32).reshape(-1)
    b2 = jnp.asarray(params["b2"], jnp.float32).reshape(-1)
    b3 = jnp.asarray(params["b3"], jnp.float32).reshape(-1)

    state_dim, hidden_dim = w1.shape
    action_dim = w3.shape[1]
    hp = _round_up(hidden_dim, _LANE)

    # Zero padding of the hidden width is exact through bias-add (zero bias)
    # and ReLU; zero rows of W3 contribute nothing to the final matmul.
    w1p = jnp.zeros((state_dim, hp), jnp.float32).at[:, :hidden_dim].set(w1)
    w2p = jnp.zeros((hp, hp), jnp.float32).at[:hidden_dim, :hidden_dim].set(w2)
    w3p = jnp.zeros((hp, action_dim), jnp.float32).at[:hidden_dim, :].set(w3)
    bias = jnp.zeros((3, hp), jnp.float32)
    bias = bias.at[0, :hidden_dim].set(b1)
    bias = bias.at[1, :hidden_dim].set(b2)
    bias = bias.at[2, :action_dim].set(b3)
    return {"w1p": w1p, "w2p": w2p, "w3p": w3p, "bias": bias}


def _forward_impl(state, prepared):
    w1p = prepared["w1p"]
    w2p = prepared["w2p"]
    w3p = prepared["w3p"]
    bias = prepared["bias"]

    B, state_dim = state.shape
    hp = w1p.shape[1]
    action_dim = w3p.shape[1]
    tile_b, n_tiles = _choose_tiling(B)

    # Advisory cost, consistent with the actual HBM layout / work done.
    flops = 2 * B * (state_dim * hp + hp * hp + hp * action_dim)
    weight_bytes = (w1p.size + w2p.size + w3p.size + bias.size) * 4
    bytes_accessed = B * state_dim * 4 + weight_bytes + B * action_dim * 4
    cost = pl.CostEstimate(flops=flops, transcendentals=0,
                           bytes_accessed=bytes_accessed)

    # VMEM: double-buffered x/out tiles + (double-buffered) resident weights,
    # plus headroom; clamp to the 32 MiB scoped budget (safe on v7x's 64 MiB).
    vmem_bytes = (2 * tile_b * state_dim * 4
                  + 2 * tile_b * action_dim * 4
                  + 2 * weight_bytes
                  + (2 << 20))
    vmem_limit = int(min(32 * 2**20, max(4 * 2**20, vmem_bytes)))

    return pl.pallas_call(
        _dqn_mlp_kernel,
        out_shape=jax.ShapeDtypeStruct((B, action_dim), jnp.float32),
        grid_spec=pltpu.PrefetchScalarGridSpec(
            num_scalar_prefetch=0,
            grid=(n_tiles,),
            in_specs=[
                pl.BlockSpec((tile_b, state_dim), lambda i: (i, 0)),  # x: batch-tiled, unpadded K
                pl.BlockSpec((state_dim, hp), lambda i: (0, 0)),      # W1: resident
                pl.BlockSpec((hp, hp), lambda i: (0, 0)),             # W2: resident
                pl.BlockSpec((hp, action_dim), lambda i: (0, 0)),     # W3: resident
                pl.BlockSpec((3, hp), lambda i: (0, 0)),              # packed biases
            ],
            out_specs=pl.BlockSpec((tile_b, action_dim), lambda i: (i, 0)),
        ),
        compiler_params=pltpu.CompilerParams(
            dimension_semantics=("parallel",),   # batch tiles independent (v7x 2-TC split)
            vmem_limit_bytes=vmem_limit,
        ),
        cost_estimate=cost,
    )(state, w1p, w2p, w3p, bias)


dqn_pricing_forward = jax.jit(_forward_impl)


def init_params(key, state_dim, hidden_dim, action_dim):
    """Deterministic synthetic init (PyTorch-like uniform fan-in scaling)."""
    ks = jax.random.split(key, 6)

    def linear(kw, kb, fan_in, fan_out):
        bound = 1.0 / jnp.sqrt(fan_in)
        w = jax.random.uniform(kw, (fan_in, fan_out), jnp.float32, -bound, bound)
        b = jax.random.uniform(kb, (fan_out,), jnp.float32, -bound, bound)
        return w, b

    w1, b1 = linear(ks[0], ks[1], state_dim, hidden_dim)
    w2, b2 = linear(ks[2], ks[3], hidden_dim, hidden_dim)
    w3, b3 = linear(ks[4], ks[5], hidden_dim, action_dim)
    return {"w1": w1, "b1": b1, "w2": w2, "b2": b2, "w3": w3, "b3": b3}


def _reference_forward(state, p):
    # Pure-f32 reference matching the PyTorch module semantics.
    h1 = jnp.maximum(state @ p["w1"] + p["b1"], 0.0)
    h2 = jnp.maximum(h1 @ p["w2"] + p["b2"], 0.0)
    return h2 @ p["w3"] + p["b3"]


# TODO(synk): the module's Adam optimizer / MSELoss are training-only utilities
# and are not part of forward(); they are intentionally not translated.

if __name__ == "__main__":
    # PricingConfig-implied small shapes.
    batch = 64
    state_dim = 16
    hidden_dim = 32
    action_dim = 8

    key = jax.random.PRNGKey(0)
    k_params, k_state, k_big = jax.random.split(key, 3)

    params = init_params(k_params, state_dim, hidden_dim, action_dim)
    prepared = prepare_params(params)   # one-time weight prep, outside the jit path

    state = jax.random.normal(k_state, (batch, state_dim), dtype=jnp.float32)
    q_values = jax.block_until_ready(dqn_pricing_forward(state, prepared))
    q_ref = _reference_forward(state, params)
    assert q_values.shape == (batch, action_dim)
    assert jnp.allclose(q_values, q_ref, atol=2e-2, rtol=2e-2), "mismatch vs reference"

    # Exercise the multi-tile pipelined path with a partial last tile
    # (B=2500 -> 2 balanced tiles of 1256 rows, second tile clipped).
    big_batch = 2500
    state_big = jax.random.normal(k_big, (big_batch, state_dim), dtype=jnp.float32)
    q_big = jax.block_until_ready(dqn_pricing_forward(state_big, prepared))
    q_big_ref = _reference_forward(state_big, params)
    assert q_big.shape == (big_batch, action_dim)
    assert jnp.allclose(q_big, q_big_ref, atol=2e-2, rtol=2e-2), "mismatch (big batch)"

    print("KERNEL_OK")
</pallas_src>

<mosaic_0001>
module attributes {stable_mosaic.version = 11 : i64} {
  func.func @_dqn_mlp_kernel(%arg0: i32, %arg1: memref<64x16xf32, #tpu.memory_space<vmem>>, %arg2: memref<16x128xf32, #tpu.memory_space<vmem>>, %arg3: memref<128x128xf32, #tpu.memory_space<vmem>>, %arg4: memref<128x8xf32, #tpu.memory_space<vmem>>, %arg5: memref<3x128xf32, #tpu.memory_space<vmem>>, %arg6: memref<64x8xf32, #tpu.memory_space<vmem>>) attributes {dimension_semantics = [#tpu.dimension_semantics<parallel>], iteration_bounds = array<i64: 1>, scalar_prefetch = 0 : i64, scratch_operands = 0 : i64, tpu.core_type = #tpu.core_type<tc>, window_params = [{transform_indices = @transform_0, window_bounds = array<i64: 64, 16>}, {pipeline_mode = #tpu.pipeline_mode<synchronous>, transform_indices = @transform_1, window_bounds = array<i64: 16, 128>}, {pipeline_mode = #tpu.pipeline_mode<synchronous>, transform_indices = @transform_2, window_bounds = array<i64: 128, 128>}, {pipeline_mode = #tpu.pipeline_mode<synchronous>, transform_indices = @transform_3, window_bounds = array<i64: 128, 8>}, {pipeline_mode = #tpu.pipeline_mode<synchronous>, transform_indices = @transform_4, window_bounds = array<i64: 3, 128>}, {transform_indices = @transform_5, window_bounds = array<i64: 64, 8>}]} {
    %c0 = arith.constant 0 : index
    %c0_0 = arith.constant 0 : index
    %0 = vector.load %arg1[%c0, %c0_0] : memref<64x16xf32, #tpu.memory_space<vmem>>, vector<64x16xf32>
    %c0_1 = arith.constant 0 : index
    %c0_2 = arith.constant 0 : index
    %1 = vector.load %arg2[%c0_1, %c0_2] : memref<16x128xf32, #tpu.memory_space<vmem>>, vector<16x128xf32>
    %cst = arith.constant dense<0.000000e+00> : vector<64x128xf32>
    %2 = tpu.matmul %0, %1, %cst {dimension_numbers = #tpu.dot_dimension_numbers<[1], [0], [0], [1], [0, 0, 1, 1], [], []>} : vector<64x16xf32>, vector<16x128xf32>, vector<64x128xf32> -> vector<64x128xf32>
    %c0_3 = arith.constant 0 : index
    %c0_4 = arith.constant 0 : index
    %3 = vector.load %arg5[%c0_3, %c0_4] : memref<3x128xf32, #tpu.memory_space<vmem>>, vector<1x128xf32>
    %4 = vector.broadcast %3 : vector<1x128xf32> to vector<64x128xf32>
    %5 = arith.addf %2, %4 : vector<64x128xf32>
    %cst_5 = arith.constant 0.000000e+00 : f32
    %6 = vector.broadcast %cst_5 : f32 to vector<64x128xf32>
    %7 = arith.maximumf %5, %6 : vector<64x128xf32>
    %c0_6 = arith.constant 0 : index
    %c0_7 = arith.constant 0 : index
    %8 = vector.load %arg3[%c0_6, %c0_7] : memref<128x128xf32, #tpu.memory_space<vmem>>, vector<128x128xf32>
    %cst_8 = arith.constant dense<0.000000e+00> : vector<64x128xf32>
    %9 = tpu.matmul %7, %8, %cst_8 {dimension_numbers = #tpu.dot_dimension_numbers<[1], [0], [0], [1], [0, 0, 1, 1], [], []>} : vector<64x128xf32>, vector<128x128xf32>, vector<64x128xf32> -> vector<64x128xf32>
    %c1 = arith.constant 1 : index
    %c0_9 = arith.constant 0 : index
    %10 = vector.load %arg5[%c1, %c0_9] : memref<3x128xf32, #tpu.memory_space<vmem>>, vector<1x128xf32>
    %11 = vector.broadcast %10 : vector<1x128xf32> to vector<64x128xf32>
    %12 = arith.addf %9, %11 : vector<64x128xf32>
    %cst_10 = arith.constant 0.000000e+00 : f32
    %13 = vector.broadcast %cst_10 : f32 to vector<64x128xf32>
    %14 = arith.maximumf %12, %13 : vector<64x128xf32>
    %c0_11 = arith.constant 0 : index
    %c0_12 = arith.constant 0 : index
    %15 = vector.load %arg4[%c0_11, %c0_12] : memref<128x8xf32, #tpu.memory_space<vmem>>, vector<128x8xf32>
    %cst_13 = arith.constant dense<0.000000e+00> : vector<64x8xf32>
    %16 = tpu.matmul %14, %15, %cst_13 {dimension_numbers = #tpu.dot_dimension_numbers<[1], [0], [0], [1], [0, 0, 1, 1], [], []>} : vector<64x128xf32>, vector<128x8xf32>, vector<64x8xf32> -> vector<64x8xf32>
    %c2 = arith.constant 2 : index
    %c0_14 = arith.constant 0 : index
    %17 = vector.load %arg5[%c2, %c0_14] : memref<3x128xf32, #tpu.memory_space<vmem>>, vector<1x8xf32>
    %18 = vector.broadcast %17 : vector<1x8xf32> to vector<64x8xf32>
    %19 = arith.addf %16, %18 : vector<64x8xf32>
    %c0_15 = arith.constant 0 : index
    %c0_16 = arith.constant 0 : index
    %20 = vector.load %arg6[%c0_15, %c0_16] : memref<64x8xf32, #tpu.memory_space<vmem>>, vector<64x8xf32>
    tpu.vector_store %arg6[%c0_15, %c0_16], %19 {strides = array<i32>} : memref<64x8xf32, #tpu.memory_space<vmem>>, vector<64x8xf32>,
    return
  }
  func.func @transform_0(%arg0: i32) -> (i32, i32) {
    %c0_i32 = arith.constant 0 : i32
    %c0_i32_0 = arith.constant 0 : i32
    return %arg0, %c0_i32 : i32, i32
  }
  func.func @transform_1(%arg0: i32) -> (i32, i32) {
    %c0_i32 = arith.constant 0 : i32
    %c0_i32_0 = arith.constant 0 : i32
    %c0_i32_1 = arith.constant 0 : i32
    return %c0_i32, %c0_i32_0 : i32, i32
  }
  func.func @transform_2(%arg0: i32) -> (i32, i32) {
    %c0_i32 = arith.constant 0 : i32
    %c0_i32_0 = arith.constant 0 : i32
    %c0_i32_1 = arith.constant 0 : i32
    return %c0_i32, %c0_i32_0 : i32, i32
  }
  func.func @transform_3(%arg0: i32) -> (i32, i32) {
    %c0_i32 = arith.constant 0 : i32
    %c0_i32_0 = arith.constant 0 : i32
    %c0_i32_1 = arith.constant 0 : i32
    return %c0_i32, %c0_i32_0 : i32, i32
  }
  func.func @transform_4(%arg0: i32) -> (i32, i32) {
    %c0_i32 = arith.constant 0 : i32
    %c0_i32_0 = arith.constant 0 : i32
    %c0_i32_1 = arith.constant 0 : i32
    return %c0_i32, %c0_i32_0 : i32, i32
  }
  func.func @transform_5(%arg0: i32) -> (i32, i32) {
    %c0_i32 = arith.constant 0 : i32
    %c0_i32_0 = arith.constant 0 : i32
    return %arg0, %c0_i32 : i32, i32
  }
}

</mosaic_0001>

<bundles_post_ra>
// kernel: _forward_impl.1
= control target key start
LH: loop header
LB: loop body
LE: loop exit
PB: predicated region body
PF: predicated region fallthrough
CT: control target
= control target key end

     0   :  { %vm32_vm0 = vcmask 130048   ;;  %vm232_vm1 = vcmask 64512   ;;  %s503_s1 = inlined_call_operand.vmem [shape: f32[16,128], index: 1, kind: input, shape index: {}]   ;;  %s504_s0 = inlined_call_operand.vmem [shape: f32[64,16], index: 0, kind: input, shape index: {}]   ;;  %s505_s4 = inlined_call_operand.vmem [shape: f32[3,128], index: 4, kind: input, shape index: {}]   ;;  %s506_s2 = inlined_call_operand.vmem [shape: f32[128,128], index: 2, kind: input, shape index: {}]   ;;  %s507_s3 = inlined_call_operand.vmem [shape: f32[128,8], index: 3, kind: input, shape index: {}]   ;;  %s508_s5 = inlined_call_operand.vmem [shape: f32[64,8], index: 5, kind: output, shape index: {}]  }
   0x1   :  { %v29_v0 = vld [vmem:[%s503_s1 + $0x8] sm:$0xff]  ;;  %v28_v1 = vld [vmem:[%s503_s1] sm:$0xff]  ;;  %v22_v4 = vld [vmem:[%s504_s0 + $0x10] sm:$0xff] }
   0x2   :  { %71 = vmatpush.msra.mxu0 %v29_v0  ;;  %v20_v2 = vld [vmem:[%s504_s0] sm:$0xff]  ;;  %v21_v3 = vld [vmem:[%s504_s0 + $0x8] sm:$0xff]  ;;  %v23_v5 = vld [vmem:[%s504_s0 + $0x18] sm:$0xff] }
   0x3   :  { %v121_v6 = vld [vmem:[%s506_s2 + $0x78] sm:$0xff]  ;;  %v120_v7 = vld [vmem:[%s506_s2 + $0x70] sm:$0xff]  ;;  %v119_v8 = vld [vmem:[%s506_s2 + $0x68] sm:$0xff] }
   0x4   :  { %72 = vmatpush.msra.mxu0 %v28_v1  ;;  %124 = vmatpush.msra.mxu1 %v121_v6  ;;  %v118_v9 = vld [vmem:[%s506_s2 + $0x60] sm:$0xff]  ;;  %v117_v11 = vld [vmem:[%s506_s2 + $0x58] sm:$0xff]  ;;  %v116_v12 = vld [vmem:[%s506_s2 + $0x50] sm:$0xff] }
   0x5   :  { %245 = vmatmul.msk.f32.vlgmr.msra.gmra.mxu0 %vm32_vm0, %v20_v2  ;;  %253 = vmatpush.msra.mxu3 %v121_v6  ;;  %v24_v10 = vld [vmem:[%s504_s0 + $0x20] sm:$0xff]  ;;  %v115_v13 = vld [vmem:[%s506_s2 + $0x48] sm:$0xff]  ;;  %v113_v16 = vld [vmem:[%s506_s2 + $0x38] sm:$0xff] }
   0x6   :  { %125 = vmatpush.msra.mxu1 %v120_v7  ;;  %v114_v14 = vld [vmem:[%s506_s2 + $0x40] sm:$0xff]  ;;  %v25_v15 = vld [vmem:[%s504_s0 + $0x28] sm:$0xff]  ;;  %v112_v17 = vld [vmem:[%s506_s2 + $0x30] sm:$0xff] }
   0x7   :  { %254 = vmatpush.msra.mxu3 %v120_v7  ;;  %v111_v18 = vld [vmem:[%s506_s2 + $0x28] sm:$0xff]  ;;  %v110_v19 = vld [vmem:[%s506_s2 + $0x20] sm:$0xff]  ;;  %v26_v20 = vld [vmem:[%s504_s0 + $0x30] sm:$0xff] }
   0x8   :  { %126 = vmatpush.msra.mxu1 %v119_v8  ;;  %v109_v21 = vld [vmem:[%s506_s2 + $0x18] sm:$0xff]  ;;  %v108_v23 = vld [vmem:[%s506_s2 + $0x10] sm:$0xff]  ;;  %v107_v24 = vld [vmem:[%s506_s2 + $0x8] sm:$0xff] }
   0x9   :  { %255 = vmatpush.msra.mxu3 %v119_v8  ;;  %v27_v22 = vld [vmem:[%s504_s0 + $0x38] sm:$0xff]  ;;  %v106_v25 = vld [vmem:[%s506_s2] sm:$0xff]  ;;  %v187_v40 = vld [vmem:[%s507_s3 + $0x70] sm:$0xff] }
   0xa   :  { %127 = vmatpush.msra.mxu1 %v118_v9  ;;  %v407_v26 = vld [vmem:[%s505_s4] ss:$0 sm:$0xff]  ;;  %v188_v39 = vld [vmem:[%s507_s3 + $0x78] sm:$0xff]  ;;  %v186_v41 = vld [vmem:[%s507_s3 + $0x68] sm:$0xff] }
   0xb   :  { %256 = vmatpush.msra.mxu3 %v118_v9  ;;  %191 = vmatpush.msra.mxu2 %v188_v39  ;;  %v185_v44 = vld [vmem:[%s507_s3 + $0x60] sm:$0xff]  ;;  %v184_v46 = vld [vmem:[%s507_s3 + $0x58] sm:$0xff]  ;;  %v183_v47 = vld [vmem:[%s507_s3 + $0x50] sm:$0xff] }
   0xc   :  { %128 = vmatpush.msra.mxu1 %v117_v11  ;;  %v182_v48 = vld [vmem:[%s507_s3 + $0x48] sm:$0xff]  ;;  %v181_v51 = vld [vmem:[%s507_s3 + $0x40] sm:$0xff]  ;;  %v180_v53 = vld [vmem:[%s507_s3 + $0x38] sm:$0xff] }
   0xd   :  { %246 = vmatmul.msk.f32.gmra.mxu0 %vm32_vm0, %v21_v3  ;;  %257 = vmatpush.msra.mxu3 %v117_v11  ;;  %v179_v54 = vld [vmem:[%s507_s3 + $0x30] sm:$0xff]  ;;  %v178_v55 = vld [vmem:[%s507_s3 + $0x28] sm:$0xff]  ;;  %v177_v58 = vld [vmem:[%s507_s3 + $0x20] sm:$0xff] }
   0xe   :  { %129 = vmatpush.msra.mxu1 %v116_v12  ;;  %192 = vmatpush.msra.mxu2 %v187_v40  ;;  %v176_v60 = vld [vmem:[%s507_s3 + $0x18] sm:$0xff]  ;;  %v175_v0 = vld [vmem:[%s507_s3 + $0x10] sm:$0xff]  ;;  %v174_v1 = vld [vmem:[%s507_s3 + $0x8] sm:$0xff] }
   0xf   :  { %258 = vmatpush.msra.mxu3 %v116_v12  ;;  %v173_v2 = vld [vmem:[%s507_s3] sm:$0xff] }
  0x10   :  { %130 = vmatpush.msra.mxu1 %v115_v13  ;;  %193 = vmatpush.msra.mxu2 %v186_v41  ;;  %v286_v3 = vld [vmem:[%s505_s4 + $0x1] ss:$0 sm:$0xff] }
  0x11   :  { %259 = vmatpush.msra.mxu3 %v115_v13 }
  0x12   :  { %131 = vmatpush.msra.mxu1 %v114_v14  ;;  %194 = vmatpush.msra.mxu2 %v185_v44 }
  0x13   :  { %260 = vmatpush.msra.mxu3 %v114_v14 }
  0x14   :  { %132 = vmatpush.msra.mxu1 %v113_v16  ;;  %195 = vmatpush.msra.mxu2 %v184_v46 }
  0x15   :  { %247 = vmatmul.msk.f32.gmra.mxu0 %vm32_vm0, %v22_v4  ;;  %261 = vmatpush.msra.mxu3 %v113_v16 }
  0x16   :  { %133 = vmatpush.msra.mxu1 %v112_v17  ;;  %196 = vmatpush.msra.mxu2 %v183_v47 }
  0x17   :  { %262 = vmatpush.msra.mxu3 %v112_v17 }
  0x18   :  { %134 = vmatpush.msra.mxu1 %v111_v18  ;;  %197 = vmatpush.msra.mxu2 %v182_v48 }
  0x19   :  { %263 = vmatpush.msra.mxu3 %v111_v18 }
  0x1a   :  { %135 = vmatpush.msra.mxu1 %v110_v19  ;;  %198 = vmatpush.msra.mxu2 %v181_v51 }
  0x1b   :  { %264 = vmatpush.msra.mxu3 %v110_v19 }
  0x1c   :  { %136 = vmatpush.msra.mxu1 %v109_v21  ;;  %199 = vmatpush.msra.mxu2 %v180_v53 }
  0x1d   :  { %248 = vmatmul.msk.f32.gmra.mxu0 %vm32_vm0, %v23_v5  ;;  %265 = vmatpush.msra.mxu3 %v109_v21 }
  0x1e   :  { %137 = vmatpush.msra.mxu1 %v108_v23  ;;  %200 = vmatpush.msra.mxu2 %v179_v54 }
  0x1f   :  { %266 = vmatpush.msra.mxu3 %v108_v23 }
  0x20   :  { %138 = vmatpush.msra.mxu1 %v107_v24  ;;  %201 = vmatpush.msra.mxu2 %v178_v55 }
  0x21   :  { %267 = vmatpush.msra.mxu3 %v107_v24 }
  0x22   :  { %139 = vmatpush.msra.mxu1 %v106_v25  ;;  %202 = vmatpush.msra.mxu2 %v177_v58 }
  0x23   :  { %268 = vmatpush.msra.mxu3 %v106_v25 }
  0x24   :  { %203 = vmatpush.msra.mxu2 %v176_v60 }
  0x25   :  { %249 = vmatmul.msk.f32.gmra.mxu0 %vm32_vm0, %v24_v10  ;;  %269 = vmatpush.msrb.mxu3 %v188_v39 }
  0x26   :  { %204 = vmatpush.msra.mxu2 %v175_v0 }
  0x27   :  { %270 = vmatpush.msrb.mxu3 %v187_v40 }
  0x28   :  { %205 = vmatpush.msra.mxu2 %v174_v1 }
  0x29   :  { %271 = vmatpush.msrb.mxu3 %v186_v41 }
  0x2a   :  { %206 = vmatpush.msra.mxu2 %v173_v2 }
  0x2b   :  { %272 = vmatpush.msrb.mxu3 %v185_v44 }
  0x2d   :  { %250 = vmatmul.msk.f32.gmra.mxu0 %vm32_vm0, %v25_v15  ;;  %273 = vmatpush.msrb.mxu3 %v184_v46 }
  0x2f   :  { %274 = vmatpush.msrb.mxu3 %v183_v47 }
  0x31   :  { %275 = vmatpush.msrb.mxu3 %v182_v48 }
  0x33   :  { %276 = vmatpush.msrb.mxu3 %v181_v51 }
  0x35   :  { %251 = vmatmul.msk.f32.gmra.mxu0 %vm32_vm0, %v26_v20  ;;  %277 = vmatpush.msrb.mxu3 %v180_v53 }
  0x37   :  { %278 = vmatpush.msrb.mxu3 %v179_v54 }
  0x39   :  { %279 = vmatpush.msrb.mxu3 %v178_v55 }
  0x3b   :  { %280 = vmatpush.msrb.mxu3 %v177_v58 }
  0x3d   :  { %252 = vmatmul.msk.f32.gmra.mxu0 %vm32_vm0, %v27_v22  ;;  %281 = vmatpush.msrb.mxu3 %v176_v60 }
  0x3f   :  { %282 = vmatpush.msrb.mxu3 %v175_v0 }
  0x41   :  { %283 = vmatpush.msrb.mxu3 %v174_v1 }
  0x43   :  { %284 = vmatpush.msrb.mxu3 %v173_v2 }
  0x82   :  { %v74_v27 = vpop.f32.mrf.mxu0 }
  0x83   :  { %v75_v28 = vadd.f32 %v407_v26, %v74_v27 }
  0x85   :  { %v98_v29 = vmax.f32 %v75_v28, 0.0  ;;  %v287_v28 = vld [vmem:[%s505_s4 + $0x2] ss:$0 sm:$0xff] }
  0x87   :  { %140 = vmatmul.f32.vlgmr.msra.gmra.mxu1 %v98_v29 }
  0x8a   :  { %v77_v30 = vpop.f32.mrf.mxu0 }
  0x8b   :  { %v78_v31 = vadd.f32 %v407_v26, %v77_v30 }
  0x8d   :  { %v99_v32 = vmax.f32 %v78_v31, 0.0 }
  0x8f   :  { %143 = vmatmul.f32.gmra.mxu1 %v99_v32 }
  0x92   :  { %v80_v33 = vpop.f32.mrf.mxu0 }
  0x93   :  { %v81_v34 = vadd.f32 %v407_v26, %v80_v33 }
  0x95   :  { %v100_v35 = vmax.f32 %v81_v34, 0.0 }
  0x97   :  { %146 = vmatmul.f32.gmra.mxu1 %v100_v35 }
  0x9a   :  { %v83_v36 = vpop.f32.mrf.mxu0 }
  0x9b   :  { %v84_v37 = vadd.f32 %v407_v26, %v83_v36 }
  0x9d   :  { %v101_v38 = vmax.f32 %v84_v37, 0.0 }
  0x9f   :  { %149 = vmatmul.f32.gmra.mxu1 %v101_v38 }
  0xa2   :  { %v86_v42 = vpop.f32.mrf.mxu0 }
  0xa3   :  { %v87_v43 = vadd.f32 %v407_v26, %v86_v42 }
  0xa5   :  { %v102_v45 = vmax.f32 %v87_v43, 0.0 }
  0xa7   :  { %152 = vmatmul.f32.gmra.mxu1 %v102_v45 }
  0xaa   :  { %v89_v49 = vpop.f32.mrf.mxu0 }
  0xab   :  { %v90_v50 = vadd.f32 %v407_v26, %v89_v49 }
  0xad   :  { %v103_v52 = vmax.f32 %v90_v50, 0.0 }
  0xaf   :  { %155 = vmatmul.f32.gmra.mxu1 %v103_v52 }
  0xb2   :  { %v92_v56 = vpop.f32.mrf.mxu0 }
  0xb3   :  { %v93_v57 = vadd.f32 %v407_v26, %v92_v56 }
  0xb5   :  { %v104_v59 = vmax.f32 %v93_v57, 0.0 }
  0xb7   :  { %158 = vmatmul.f32.vlgmr.msra.gmra.mxu3 %v104_v59 }
  0xba   :  { %v95_v61 = vpop.f32.mrf.mxu0 }
  0xbb   :  { %v96_v62 = vadd.f32 %v407_v26, %v95_v61 }
  0xbd   :  { %v105_v63 = vmax.f32 %v96_v62, 0.0 }
  0xbf   :  { %161 = vmatmul.f32.gmra.mxu3 %v105_v63 }
 0x104   :  { %v141_v4 = vpop.f32.mrf.mxu1 }
 0x105   :  { %v142_v5 = vadd.f32 %v286_v3, %v141_v4 }
 0x107   :  { %v165_v6 = vmax.f32 %v142_v5, 0.0 }
 0x109   :  { %207 = vmatmul.f32.vlgmr.msra.gmra.mxu2 %v165_v6 }
 0x10c   :  { %v144_v7 = vpop.f32.mrf.mxu1 }
 0x10d   :  { %v145_v8 = vadd.f32 %v286_v3, %v144_v7 }
 0x10f   :  { %v166_v9 = vmax.f32 %v145_v8, 0.0 }
 0x111   :  { %210 = vmatmul.f32.gmra.mxu2 %v166_v9 }
 0x114   :  { %v147_v10 = vpop.f32.mrf.mxu1 }
 0x115   :  { %v148_v11 = vadd.f32 %v286_v3, %v147_v10 }
 0x117   :  { %v167_v12 = vmax.f32 %v148_v11, 0.0 }
 0x119   :  { %213 = vmatmul.f32.gmra.mxu2 %v167_v12 }
 0x11c   :  { %v150_v13 = vpop.f32.mrf.mxu1 }
 0x11d   :  { %v151_v14 = vadd.f32 %v286_v3, %v150_v13 }
 0x11f   :  { %v168_v15 = vmax.f32 %v151_v14, 0.0 }
 0x121   :  { %216 = vmatmul.f32.gmra.mxu2 %v168_v15 }
 0x124   :  { %v153_v16 = vpop.f32.mrf.mxu1 }
 0x125   :  { %v154_v17 = vadd.f32 %v286_v3, %v153_v16 }
 0x127   :  { %v169_v18 = vmax.f32 %v154_v17, 0.0 }
 0x129   :  { %219 = vmatmul.f32.gmra.mxu2 %v169_v18 }
 0x12c   :  { %v156_v19 = vpop.f32.mrf.mxu1 }
 0x12d   :  { %v157_v20 = vadd.f32 %v286_v3, %v156_v19 }
 0x12f   :  { %v170_v21 = vmax.f32 %v157_v20, 0.0 }
 0x131   :  { %222 = vmatmul.f32.gmra.mxu2 %v170_v21 }
 0x13a   :  { %v159_v22 = vpop.f32.mrf.mxu3 }
 0x13b   :  { %v160_v23 = vadd.f32 %v286_v3, %v159_v22 }
 0x13d   :  { %v171_v24 = vmax.f32 %v160_v23, 0.0 }
 0x13f   :  { %225 = vmatmul.f32.vlgmr.msrb.gmra.mxu3 %v171_v24 }
 0x142   :  { %v162_v25 = vpop.f32.mrf.mxu3 }
 0x143   :  { %v163_v26 = vadd.f32 %v286_v3, %v162_v25 }
 0x145   :  { %v172_v27 = vmax.f32 %v163_v26, 0.0 }
 0x147   :  { %228 = vmatmul.f32.gmra.mxu3 %v172_v27 }
 0x18c   :  { %v208_v29 = vpop.f32.mrf.mxu2 }
 0x18d   :  { %v209_v30 = vadd.f32 %v287_v28, %v208_v29 }
 0x18f   :  { %233 = vst.msk [vmem:[%s508_s5] sm:$0xff] %vm232_vm1, %v209_v30 }
 0x194   :  { %v211_v31 = vpop.f32.mrf.mxu2 }
 0x195   :  { %v212_v32 = vadd.f32 %v287_v28, %v211_v31 }
 0x197   :  { %234 = vst.msk [vmem:[%s508_s5 + $0x8] sm:$0xff] %vm232_vm1, %v212_v32 }
 0x19c   :  { %v214_v33 = vpop.f32.mrf.mxu2 }
 0x19d   :  { %v215_v34 = vadd.f32 %v287_v28, %v214_v33 }
 0x19f   :  { %235 = vst.msk [vmem:[%s508_s5 + $0x10] sm:$0xff] %vm232_vm1, %v215_v34 }
 0x1a4   :  { %v217_v35 = vpop.f32.mrf.mxu2 }
 0x1a5   :  { %v218_v36 = vadd.f32 %v287_v28, %v217_v35 }
 0x1a7   :  { %236 = vst.msk [vmem:[%s508_s5 + $0x18] sm:$0xff] %vm232_vm1, %v218_v36 }
 0x1ac   :  { %v220_v37 = vpop.f32.mrf.mxu2 }
 0x1ad   :  { %v221_v38 = vadd.f32 %v287_v28, %v220_v37 }
 0x1af   :  { %237 = vst.msk [vmem:[%s508_s5 + $0x20] sm:$0xff] %vm232_vm1, %v221_v38 }
 0x1b4   :  { %v223_v39 = vpop.f32.mrf.mxu2 }
 0x1b5   :  { %v224_v40 = vadd.f32 %v287_v28, %v223_v39 }
 0x1b7   :  { %238 = vst.msk [vmem:[%s508_s5 + $0x28] sm:$0xff] %vm232_vm1, %v224_v40 }
 0x1c2   :  { %v226_v41 = vpop.f32.mrf.mxu3 }
 0x1c3   :  { %v227_v42 = vadd.f32 %v287_v28, %v226_v41 }
 0x1c5   :  { %239 = vst.msk [vmem:[%s508_s5 + $0x30] sm:$0xff] %vm232_vm1, %v227_v42 }
 0x1ca   :  { %v229_v43 = vpop.f32.mrf.mxu3 }
 0x1cb   :  { %v230_v44 = vadd.f32 %v287_v28, %v229_v43 }
 0x1cd   :  { %240 = vst.msk [vmem:[%s508_s5 + $0x38] sm:$0xff] %vm232_vm1, %v230_v44 }

</bundles_post_ra>
